<compile_context>
chip_gen: v7x
topology: tpu7x:2x2x1
jax: 0.10.0
libtpu: 0.0.40
codegen_flags: <defaults>
</compile_context>

<pallas_src>
import functools

import jax
import jax.numpy as jnp
from jax import lax
from jax.experimental import pallas as pl
from jax.experimental.pallas import tpu as pltpu

_SUBLANE = 8
_LANE = 128


def _round_up(n, m):
    return ((n + m - 1) // m) * m


# ----------------------------------------------------------------------------
# Kernel: fused 3-layer MLP.  x tile arrives in natural (bt, in_dim) layout;
# all activations are lane-dense (features on sublanes, batch on lanes) so
# every store is a full-width unmasked vst.
# ----------------------------------------------------------------------------
def _mlp_kernel(x_ref, w1_ref, b1_ref, w2_ref, b2_ref, w3_ref, b3_ref, o_ref):
    # layer1: contract the in_dim axis of W1^T (p_h1, in) and x (bt, in)
    # -> (p_h1, bt); Mosaic handles the x-tile transpose on the XLU.
    h1 = lax.dot_general(
        w1_ref[...], x_ref[...],
        dimension_numbers=(((1,), (1,)), ((), ())),
        preferred_element_type=jnp.float32,
    )
    h1 = jax.nn.sigmoid(h1 + b1_ref[...])
    # layer2 + sigmoid: (p_h2, p_h1) @ (p_h1, bt) -> (p_h2, bt)
    h2 = jnp.dot(w2_ref[...], h1, preferred_element_type=jnp.float32)
    h2 = jax.nn.sigmoid(h2 + b2_ref[...])
    # layer3 (no activation): (p_out, p_h2) @ (p_h2, bt) -> (p_out, bt)
    out = jnp.dot(w3_ref[...], h2, preferred_element_type=jnp.float32) + b3_ref[...]
    o_ref[...] = out.astype(o_ref.dtype)


# ----------------------------------------------------------------------------
# One-time parameter preparation: transpose to (fan_out, fan_in) and zero-pad
# the fan_out dims (and inner fan_in dims of layers 2/3) to sublane multiples.
# Padded hidden rows produce sigmoid(0)=0.5 but are multiplied by zero-padded
# weight columns in the next layer, so the result stays exact.
# Returns (array-only pytree, python dims tuple) so nothing non-array leaks
# into jit as a tracer.
# ----------------------------------------------------------------------------
def prepare_params(params):
    w1, b1 = params["w1"], params["b1"]
    w2, b2 = params["w2"], params["b2"]
    w3, b3 = params["w3"], params["b3"]
    in_dim, h1 = w1.shape
    _, h2 = w2.shape
    _, out_dim = w3.shape

    p_h1 = _round_up(h1, _SUBLANE)
    p_h2 = _round_up(h2, _SUBLANE)
    p_out = _round_up(out_dim, _SUBLANE)

    def pad2(a, rows, cols):
        out = jnp.zeros((rows, cols), a.dtype)
        return out.at[: a.shape[0], : a.shape[1]].set(a)

    kparams = {
        "w1": pad2(w1.T, p_h1, in_dim),        # fan_in kept at in_dim (matches x tile)
        "b1": pad2(b1.reshape(-1, 1), p_h1, 1),
        "w2": pad2(w2.T, p_h2, p_h1),
        "b2": pad2(b2.reshape(-1, 1), p_h2, 1),
        "w3": pad2(w3.T, p_out, p_h2),
        "b3": pad2(b3.reshape(-1, 1), p_out, 1),
    }
    dims = (in_dim, h1, h2, out_dim)
    return kparams, dims


# ----------------------------------------------------------------------------
# Wrapper: 1-D batch grid, natural-layout x input, lane-dense output.
# ----------------------------------------------------------------------------
@functools.partial(jax.jit, static_argnames=("out_dim", "batch_tile"))
def net_forward(x, kparams, *, out_dim, batch_tile=16384):
    """x: (batch, in_dim) float32; kparams: arrays from prepare_params."""
    w1, b1 = kparams["w1"], kparams["b1"]
    w2, b2 = kparams["w2"], kparams["b2"]
    w3, b3 = kparams["w3"], kparams["b3"]
    batch, in_dim = x.shape
    p_h1 = w1.shape[0]
    p_h2 = w2.shape[0]
    p_out = w3.shape[0]

    # Batch tile: multiple of 128 lanes, large to amortize per-step overhead,
    # but capped so large batches always yield >=2 tiles (v7x megacore).
    b_lanes = _round_up(batch, _LANE)
    bt = min(_round_up(batch_tile, _LANE), b_lanes)
    if b_lanes >= 2 * _LANE:
        bt = min(bt, _round_up(pl.cdiv(b_lanes, 2), _LANE))
    n_tiles = pl.cdiv(batch, bt)

    # Rough VMEM need: double-buffered x + out blocks plus lane-dense
    # intermediates.  Clamp into [32 MiB, 64 MiB] so big tiles compile on v5e
    # (16 MiB default scoped limit) without exceeding v7x physical VMEM.
    est_vmem = 4 * bt * (2 * in_dim + 2 * p_out + 2 * (p_h1 + p_h2)) + (2 << 20)
    vmem_limit = min(max(est_vmem, 32 << 20), 64 << 20)

    cost = pl.CostEstimate(
        flops=2 * batch * (in_dim * p_h1 + p_h1 * p_h2 + p_h2 * p_out),
        transcendentals=batch * (p_h1 + p_h2),
        bytes_accessed=4 * batch * (in_dim + out_dim),
    )

    def const_spec(shape):
        # Weights/biases: single full-array block, resident across the grid.
        return pl.BlockSpec(shape, lambda i: (0, 0))

    out_p = pl.pallas_call(
        _mlp_kernel,
        out_shape=jax.ShapeDtypeStruct((p_out, batch), x.dtype),
        grid=(n_tiles,),
        in_specs=[
            pl.BlockSpec((bt, in_dim), lambda i: (i, 0)),  # natural-layout x tile
            const_spec(w1.shape),
            const_spec(b1.shape),
            const_spec(w2.shape),
            const_spec(b2.shape),
            const_spec(w3.shape),
            const_spec(b3.shape),
        ],
        out_specs=pl.BlockSpec((p_out, bt), lambda i: (0, i)),  # lane-dense output
        compiler_params=pltpu.CompilerParams(
            dimension_semantics=("parallel",),   # megacore split on v7x
            vmem_limit_bytes=vmem_limit,
        ),
        cost_estimate=cost,
    )(x, w1, b1, w2, b2, w3, b3)

    # Only a tiny (out_dim x batch) slice/transpose back to PyTorch layout.
    return out_p[:out_dim, :].T


# ----------------------------------------------------------------------------
# Parameter init (PyTorch-Linear-style uniform ranges) and pure-JAX reference.
# ----------------------------------------------------------------------------
def init_params(key, in_dim=5, n_hidden_1=10, n_hidden_2=10, out_dim=5):
    ks = jax.random.split(key, 6)

    def linear(kw, kb, fan_in, fan_out):
        bound = 1.0 / jnp.sqrt(fan_in)
        w = jax.random.uniform(kw, (fan_in, fan_out), jnp.float32, -bound, bound)
        b = jax.random.uniform(kb, (fan_out,), jnp.float32, -bound, bound)
        return w, b

    w1, b1 = linear(ks[0], ks[1], in_dim, n_hidden_1)
    w2, b2 = linear(ks[2], ks[3], n_hidden_1, n_hidden_2)
    w3, b3 = linear(ks[4], ks[5], n_hidden_2, out_dim)
    return {"w1": w1, "b1": b1, "w2": w2, "b2": b2, "w3": w3, "b3": b3}


def net_forward_ref(x, params):
    h = jax.nn.sigmoid(x @ params["w1"] + params["b1"])
    h = jax.nn.sigmoid(h @ params["w2"] + params["b2"])
    return h @ params["w3"] + params["b3"]


if __name__ == "__main__":
    key = jax.random.PRNGKey(0)
    k_param, k_x1, k_x2 = jax.random.split(key, 3)

    in_dim, n_hidden_1, n_hidden_2, out_dim = 5, 10, 10, 5
    params = init_params(k_param, in_dim, n_hidden_1, n_hidden_2, out_dim)
    kparams, dims = prepare_params(params)  # pad/transpose once, reused across calls

    # Small demo batch (matches the module's tiny shapes).
    batch = 8
    x = jax.random.normal(k_x1, (batch, in_dim), jnp.float32)
    out = jax.block_until_ready(net_forward(x, kparams, out_dim=dims[3]))
    ref = net_forward_ref(x, params)
    assert out.shape == (batch, out_dim)
    assert jnp.allclose(out, ref, atol=1e-5, rtol=1e-5), "mismatch vs reference (small)"

    # Larger ragged batch to exercise the batch grid + partial-tile path.
    batch2 = 300
    x2 = jax.random.normal(k_x2, (batch2, in_dim), jnp.float32)
    out2 = jax.block_until_ready(
        net_forward(x2, kparams, out_dim=dims[3], batch_tile=128)
    )
    ref2 = net_forward_ref(x2, params)
    assert out2.shape == (batch2, out_dim)
    assert jnp.allclose(out2, ref2, atol=1e-5, rtol=1e-5), "mismatch vs reference (tiled)"

    print("KERNEL_OK")
</pallas_src>

<mosaic_0001>
module attributes {stable_mosaic.version = 11 : i64} {
  func.func @_mlp_kernel(%arg0: i32, %arg1: memref<128x5xf32, #tpu.memory_space<vmem>>, %arg2: memref<16x5xf32, #tpu.memory_space<vmem>>, %arg3: memref<16x1xf32, #tpu.memory_space<vmem>>, %arg4: memref<16x16xf32, #tpu.memory_space<vmem>>, %arg5: memref<16x1xf32, #tpu.memory_space<vmem>>, %arg6: memref<8x16xf32, #tpu.memory_space<vmem>>, %arg7: memref<8x1xf32, #tpu.memory_space<vmem>>, %arg8: memref<8x128xf32, #tpu.memory_space<vmem>>) attributes {dimension_semantics = [#tpu.dimension_semantics<parallel>], iteration_bounds = array<i64: 1>, scalar_prefetch = 0 : i64, scratch_operands = 0 : i64, tpu.core_type = #tpu.core_type<tc>, window_params = [{transform_indices = @transform_0, window_bounds = array<i64: 128, 5>}, {pipeline_mode = #tpu.pipeline_mode<synchronous>, transform_indices = @transform_1, window_bounds = array<i64: 16, 5>}, {pipeline_mode = #tpu.pipeline_mode<synchronous>, transform_indices = @transform_2, window_bounds = array<i64: 16, 1>}, {pipeline_mode = #tpu.pipeline_mode<synchronous>, transform_indices = @transform_3, window_bounds = array<i64: 16, 16>}, {pipeline_mode = #tpu.pipeline_mode<synchronous>, transform_indices = @transform_4, window_bounds = array<i64: 16, 1>}, {pipeline_mode = #tpu.pipeline_mode<synchronous>, transform_indices = @transform_5, window_bounds = array<i64: 8, 16>}, {pipeline_mode = #tpu.pipeline_mode<synchronous>, transform_indices = @transform_6, window_bounds = array<i64: 8, 1>}, {transform_indices = @transform_7, window_bounds = array<i64: 8, 128>}]} {
    %c0 = arith.constant 0 : index
    %c0_0 = arith.constant 0 : index
    %0 = vector.load %arg2[%c0, %c0_0] : memref<16x5xf32, #tpu.memory_space<vmem>>, vector<16x5xf32>
    %c0_1 = arith.constant 0 : index
    %c0_2 = arith.constant 0 : index
    %1 = vector.load %arg1[%c0_1, %c0_2] : memref<128x5xf32, #tpu.memory_space<vmem>>, vector<128x5xf32>
    %cst = arith.constant dense<0.000000e+00> : vector<16x128xf32>
    %2 = tpu.matmul %0, %1, %cst {dimension_numbers = #tpu.dot_dimension_numbers<[1], [1], [0], [0], [0, 0, 1, 0], [], []>} : vector<16x5xf32>, vector<128x5xf32>, vector<16x128xf32> -> vector<16x128xf32>
    %c0_3 = arith.constant 0 : index
    %c0_4 = arith.constant 0 : index
    %3 = vector.load %arg3[%c0_3, %c0_4] : memref<16x1xf32, #tpu.memory_space<vmem>>, vector<16x1xf32>
    %4 = vector.broadcast %3 : vector<16x1xf32> to vector<16x128xf32>
    %5 = arith.addf %2, %4 : vector<16x128xf32>
    %6 = arith.negf %5 : vector<16x128xf32>
    %7 = math.exp %6 : vector<16x128xf32>
    %cst_5 = arith.constant 1.000000e+00 : f32
    %8 = vector.broadcast %cst_5 : f32 to vector<16x128xf32>
    %9 = arith.addf %8, %7 : vector<16x128xf32>
    %10 = arith.divf %8, %9 : vector<16x128xf32>
    %c0_6 = arith.constant 0 : index
    %c0_7 = arith.constant 0 : index
    %11 = vector.load %arg4[%c0_6, %c0_7] : memref<16x16xf32, #tpu.memory_space<vmem>>, vector<16x16xf32>
    %cst_8 = arith.constant dense<0.000000e+00> : vector<16x128xf32>
    %12 = tpu.matmul %11, %10, %cst_8 {dimension_numbers = #tpu.dot_dimension_numbers<[1], [0], [0], [1], [0, 0, 1, 1], [], []>} : vector<16x16xf32>, vector<16x128xf32>, vector<16x128xf32> -> vector<16x128xf32>
    %c0_9 = arith.constant 0 : index
    %c0_10 = arith.constant 0 : index
    %13 = vector.load %arg5[%c0_9, %c0_10] : memref<16x1xf32, #tpu.memory_space<vmem>>, vector<16x1xf32>
    %14 = vector.broadcast %13 : vector<16x1xf32> to vector<16x128xf32>
    %15 = arith.addf %12, %14 : vector<16x128xf32>
    %16 = arith.negf %15 : vector<16x128xf32>
    %17 = math.exp %16 : vector<16x128xf32>
    %cst_11 = arith.constant 1.000000e+00 : f32
    %18 = vector.broadcast %cst_11 : f32 to vector<16x128xf32>
    %19 = arith.addf %18, %17 : vector<16x128xf32>
    %20 = arith.divf %18, %19 : vector<16x128xf32>
    %c0_12 = arith.constant 0 : index
    %c0_13 = arith.constant 0 : index
    %21 = vector.load %arg6[%c0_12, %c0_13] : memref<8x16xf32, #tpu.memory_space<vmem>>, vector<8x16xf32>
    %cst_14 = arith.constant dense<0.000000e+00> : vector<8x128xf32>
    %22 = tpu.matmul %21, %20, %cst_14 {dimension_numbers = #tpu.dot_dimension_numbers<[1], [0], [0], [1], [0, 0, 1, 1], [], []>} : vector<8x16xf32>, vector<16x128xf32>, vector<8x128xf32> -> vector<8x128xf32>
    %c0_15 = arith.constant 0 : index
    %c0_16 = arith.constant 0 : index
    %23 = vector.load %arg7[%c0_15, %c0_16] : memref<8x1xf32, #tpu.memory_space<vmem>>, vector<8x1xf32>
    %24 = vector.broadcast %23 : vector<8x1xf32> to vector<8x128xf32>
    %25 = arith.addf %22, %24 : vector<8x128xf32>
    %c0_17 = arith.constant 0 : index
    %c0_18 = arith.constant 0 : index
    %26 = vector.load %arg8[%c0_17, %c0_18] : memref<8x128xf32, #tpu.memory_space<vmem>>, vector<8x128xf32>
    tpu.vector_store %arg8[%c0_17, %c0_18], %25 {strides = array<i32>} : memref<8x128xf32, #tpu.memory_space<vmem>>, vector<8x128xf32>,
    return
  }
  func.func @transform_0(%arg0: i32) -> (i32, i32) {
    %c0_i32 = arith.constant 0 : i32
    %c0_i32_0 = arith.constant 0 : i32
    return %arg0, %c0_i32 : i32, i32
  }
  func.func @transform_1(%arg0: i32) -> (i32, i32) {
    %c0_i32 = arith.constant 0 : i32
    %c0_i32_0 = arith.constant 0 : i32
    %c0_i32_1 = arith.constant 0 : i32
    return %c0_i32, %c0_i32_0 : i32, i32
  }
  func.func @transform_2(%arg0: i32) -> (i32, i32) {
    %c0_i32 = arith.constant 0 : i32
    %c0_i32_0 = arith.constant 0 : i32
    %c0_i32_1 = arith.constant 0 : i32
    return %c0_i32, %c0_i32_0 : i32, i32
  }
  func.func @transform_3(%arg0: i32) -> (i32, i32) {
    %c0_i32 = arith.constant 0 : i32
    %c0_i32_0 = arith.constant 0 : i32
    %c0_i32_1 = arith.constant 0 : i32
    return %c0_i32, %c0_i32_0 : i32, i32
  }
  func.func @transform_4(%arg0: i32) -> (i32, i32) {
    %c0_i32 = arith.constant 0 : i32
    %c0_i32_0 = arith.constant 0 : i32
    %c0_i32_1 = arith.constant 0 : i32
    return %c0_i32, %c0_i32_0 : i32, i32
  }
  func.func @transform_5(%arg0: i32) -> (i32, i32) {
    %c0_i32 = arith.constant 0 : i32
    %c0_i32_0 = arith.constant 0 : i32
    %c0_i32_1 = arith.constant 0 : i32
    return %c0_i32, %c0_i32_0 : i32, i32
  }
  func.func @transform_6(%arg0: i32) -> (i32, i32) {
    %c0_i32 = arith.constant 0 : i32
    %c0_i32_0 = arith.constant 0 : i32
    %c0_i32_1 = arith.constant 0 : i32
    return %c0_i32, %c0_i32_0 : i32, i32
  }
  func.func @transform_7(%arg0: i32) -> (i32, i32) {
    %c0_i32 = arith.constant 0 : i32
    %c0_i32_0 = arith.constant 0 : i32
    return %c0_i32, %arg0 : i32, i32
  }
}

</mosaic_0001>

<bundles_post_ra>
// kernel: net_forward.1
= control target key start
LH: loop header
LB: loop body
LE: loop exit
PB: predicated region body
PF: predicated region fallthrough
CT: control target
= control target key end

     0   :  { %vm56_vm0 = vcmask 39936   ;;  %v567_v3 = vmov 0   ;;  %vm212_vm2 = vcmask 130048   ;;  %v568_v50 = vmov 0.0|0.0   ;;  %s735_s0 = inlined_call_operand.vmem [shape: f32[8,5], index: 0, kind: input, shape index: {}]   ;;  %s736_s1 = inlined_call_operand.vmem [shape: f32[16,5], index: 1, kind: input, shape index: {}]   ;;  %s737_s2 = inlined_call_operand.vmem [shape: f32[16,1], index: 2, kind: input, shape index: {}]   ;;  %s738_s6 = inlined_call_operand.vmem [shape: f32[8,1], index: 6, kind: input, shape index: {}]   ;;  %s739_s3 = inlined_call_operand.vmem [shape: f32[16,16], index: 3, kind: input, shape index: {}]   ;;  %s740_s4 = inlined_call_operand.vmem [shape: f32[16,1], index: 4, kind: input, shape index: {}]   ;;  %s741_s5 = inlined_call_operand.vmem [shape: f32[8,16], index: 5, kind: input, shape index: {}]   ;;  %s742_s7 = inlined_call_operand.vmem [shape: f32[8,8], index: 7, kind: output, shape index: {}]  }
   0x1   :  { %v28_v0 = vld [vmem:[%s735_s0] sm:$0xff]  ;;  %v29_v1 = vld [vmem:[%s735_s0 + $0x8] sm:$0xff]  ;;  %vm619_vm1 = vmpackc.low %vm56_vm0, %vm56_vm0  ;;  %549 = vset.pattern.permute.xlu0 %v567_v3  ;;  %550 = vset.pattern.permute.xlu1 %v567_v3  ;;  %vm569_vm3 = vmmov 0   ;;  %v570_v51 = vmov 0.0  }
   0x2   :  { %v490_v4 = vpack.c.bf16 %v29_v1, %v28_v0  ;;  %v30_v5 = vld [vmem:[%s735_s0 + $0x10] sm:$0xff]  ;;  %v31_v6 = vld [vmem:[%s735_s0 + $0x18] sm:$0xff]  ;;  %v26_v8 = vld [vmem:[%s736_s1] sm:$0xff] }
   0x3   :  { %v496_v7 = vpack.c.bf16 %v31_v6, %v30_v5  ;;  %v32_v9 = vld [vmem:[%s735_s0 + $0x20] sm:$0xff]  ;;  %v33_v10 = vld [vmem:[%s735_s0 + $0x28] sm:$0xff]  ;;  %473 = vmatprep.mubr.msk.f32.mxu0 %vm56_vm0, %v26_v8  ;;  %v34_v15 = vld [vmem:[%s735_s0 + $0x30] sm:$0xff] }
   0x4   :  { %492 = vmatprep.subr.msk.bf16.mxu0 %vm619_vm1, %v490_v4  ;;  %v44_v11 = vld [vmem:[%s737_s2] sm:$0xff]  ;;  %v45_v12 = vld [vmem:[%s737_s2 + $0x8] sm:$0xff]  ;;  %v502_v13 = vpack.c.bf16 %v33_v10, %v32_v9  ;;  %v35_v16 = vld [vmem:[%s735_s0 + $0x38] sm:$0xff] }
   0x5   :  { %495 = vmatpush3.bf16.xpose.msk.msra.mxu0 %vm619_vm1, %v490_v4  ;;  %48 = vperm.xlu0 %549, %v44_v11   ;;  %v307_v14 = vld [vmem:[%s738_s6] sm:$0xff]  ;;  %v508_v17 = vpack.c.bf16 %v35_v16, %v34_v15  ;;  %v37_v19 = vld [vmem:[%s735_s0 + $0x48] sm:$0xff]  ;;  %v38_v21 = vld [vmem:[%s735_s0 + $0x50] sm:$0xff] }
   0x6   :  { %498 = vmatprep.subr.msk.bf16.mxu0 %vm619_vm1, %v496_v7  ;;  %v36_v18 = vld [vmem:[%s735_s0 + $0x40] sm:$0xff]  ;;  %v39_v22 = vld [vmem:[%s735_s0 + $0x58] sm:$0xff]  ;;  %v41_v25 = vld [vmem:[%s735_s0 + $0x68] sm:$0xff] }
   0x7   :  { %v514_v20 = vpack.c.bf16 %v37_v19, %v36_v18  ;;  %v520_v23 = vpack.c.bf16 %v39_v22, %v38_v21  ;;  %v40_v24 = vld [vmem:[%s735_s0 + $0x60] sm:$0xff]  ;;  %v42_v27 = vld [vmem:[%s735_s0 + $0x70] sm:$0xff]  ;;  %v43_v28 = vld [vmem:[%s735_s0 + $0x78] sm:$0xff] }
   0x8   :  { %v526_v26 = vpack.c.bf16 %v41_v25, %v40_v24  ;;  %v532_v29 = vpack.c.bf16 %v43_v28, %v42_v27  ;;  %v27_v30 = vld [vmem:[%s736_s1 + $0x8] sm:$0xff]  ;;  %v198_v31 = vld [vmem:[%s739_s3] sm:$0xff] }
   0x9   :  { %53 = vperm.xlu0 %549, %v45_v12   ;;  %480 = vmatprep.mubr.msk.f32.mxu1 %vm212_vm2, %v198_v31  ;;  %v200_v32 = vld [vmem:[%s740_s4] sm:$0xff]  ;;  %v201_v33 = vld [vmem:[%s740_s4 + $0x8] sm:$0xff] }
   0xa   :  { %204 = vperm.xlu1 %550, %v200_v32   ;;  %v199_v49 = vld [vmem:[%s739_s3 + $0x8] sm:$0xff]  ;;  %v306_v3 = vld [vmem:[%s741_s5] sm:$0xff] }
   0xd   :  { %501 = vmatpush3.bf16.xpose.msk.msra.mxu0 %vm619_vm1, %v496_v7  ;;  %310 = vperm.xlu0 %549, %v307_v14  }
   0xe   :  { %504 = vmatprep.subr.msk.bf16.mxu0 %vm619_vm1, %v502_v13  ;;  %209 = vperm.xlu1 %550, %v201_v33  }
  0x15   :  { %507 = vmatpush3.bf16.xpose.msk.msra.mxu0 %vm619_vm1, %v502_v13 }
  0x16   :  { %510 = vmatprep.subr.msk.bf16.mxu0 %vm619_vm1, %v508_v17 }
  0x1d   :  { %513 = vmatpush3.bf16.xpose.msk.msra.mxu0 %vm619_vm1, %v508_v17 }
  0x1e   :  { %516 = vmatprep.subr.msk.bf16.mxu0 %vm619_vm1, %v514_v20 }
  0x25   :  { %519 = vmatpush3.bf16.xpose.msk.msra.mxu0 %vm619_vm1, %v514_v20 }
  0x26   :  { %522 = vmatprep.subr.msk.bf16.mxu0 %vm619_vm1, %v520_v23 }
  0x2d   :  { %525 = vmatpush3.bf16.xpose.msk.msra.mxu0 %vm619_vm1, %v520_v23 }
  0x2e   :  { %528 = vmatprep.subr.msk.bf16.mxu0 %vm619_vm1, %v526_v26 }
  0x35   :  { %531 = vmatpush3.bf16.xpose.msk.msra.mxu0 %vm619_vm1, %v526_v26 }
  0x36   :  { %534 = vmatprep.subr.msk.bf16.mxu0 %vm619_vm1, %v532_v29 }
  0x3d   :  { %537 = vmatpush3.bf16.xpose.msk.msra.mxu0 %vm619_vm1, %v532_v29 }
  0x44   :  { %474 = vmatmul.mubr.msk.f32.vlgmr.msra.gmra.mrb[0].mxu0 %vm56_vm0, %v27_v30 }
  0x84   :  { %v49_v34 = vpop.permute.xlu0 %48 }
  0x88   :  { %v54_v35 = vpop.permute.xlu0 %53 }
  0x89   :  { %v205_v52 = vpop.permute.xlu1 %204 }
  0x8c   :  { %v311_v4 = vpop.permute.xlu0 %310 }
  0x8d   :  { %v210_v53 = vpop.permute.xlu1 %209 }
 0x117   :  { %v475_v36 = vpop.f32.mrb[0].mxu0 }
 0x118   :  { %v183_v37 = vadd.f32 %v475_v36, %v54_v35  ;;  %v177_v38 = vpop.f32.mrb[1].mxu0 }
 0x119   :  { %v178_v39 = vadd.f32 %v177_v38, %v49_v34 }
 0x11a   :  { %v410_v40 = vmul.f32 -1.442695, %v183_v37 }
 0x11b   :  { %v409_v41 = vmul.f32 -1.442695, %v178_v39 }
 0x11c   :  { %551 = vpow2.f32 %v410_v40 }
 0x11d   :  { %553 = vpow2.f32 %v409_v41 }
 0x126   :  { %v552_v42 = vpop.eup %551 }
 0x127   :  { %v554_v43 = vpop.eup %553  ;;  %v193_v44 = vadd.f32 1.0, %v552_v42 }
 0x128   :  { %v192_v45 = vadd.f32 1.0, %v554_v43 }
 0x129   :  { %555 = vrcp.f32 %v193_v44 }
 0x12a   :  { %557 = vrcp.f32 %v192_v45 }
 0x133   :  { %v556_v46 = vpop.eup %555 }
 0x134   :  { %v558_v47 = vpop.eup %557 }
 0x135   :  { %v538_v48 = vpack.c.bf16 %v556_v46, %v558_v47 }
 0x137   :  { %539 = vmatprep.subr.bf16.mxu1 %v538_v48 }
 0x138   :  { %541 = vmatpush3.bf16.msra.mxu1 %v538_v48 }
 0x139   :  { %542 = vmatprep.subr.bf16.mxu1 %v568_v50 }
 0x13b   :  { %481 = vmatmul.mubr.msk.f32.vlgmr.msra.gmra.mrb[0].mxu1 %vm212_vm2, %v199_v49 }
 0x13c   :  { %487 = vmatprep.mubr.msk.f32.mxu1 %vm569_vm3, %v570_v51 }
 0x20e   :  { %v482_v54 = vpop.f32.mrb[0].mxu1 }
 0x20f   :  { %v291_v55 = vadd.f32 %v482_v54, %v210_v53  ;;  %v285_v56 = vpop.f32.mrb[1].mxu1 }
 0x210   :  { %v286_v57 = vadd.f32 %v285_v56, %v205_v52 }
 0x211   :  { %v414_v58 = vmul.f32 -1.442695, %v291_v55 }
 0x212   :  { %v413_v59 = vmul.f32 -1.442695, %v286_v57 }
 0x213   :  { %559 = vpow2.f32 %v414_v58 }
 0x214   :  { %561 = vpow2.f32 %v413_v59 }
 0x21d   :  { %v560_v60 = vpop.eup %559 }
 0x21e   :  { %v562_v61 = vpop.eup %561  ;;  %v301_v62 = vadd.f32 1.0, %v560_v60 }
 0x21f   :  { %v300_v63 = vadd.f32 1.0, %v562_v61 }
 0x220   :  { %563 = vrcp.f32 %v301_v62 }
 0x221   :  { %565 = vrcp.f32 %v300_v63 }
 0x22a   :  { %v564_v0 = vpop.eup %563 }
 0x22b   :  { %v566_v1 = vpop.eup %565 }
 0x22c   :  { %v543_v2 = vpack.c.bf16 %v564_v0, %v566_v1 }
 0x22e   :  { %544 = vmatpush3.bf16.msra.mxu1 %v543_v2 }
 0x231   :  { %488 = vmatmul.mubr.msk.f32.vlgmr.msra.gmra.mrb[2].mxu1 %vm212_vm2, %v306_v3 }
 0x304   :  { %v382_v5 = vpop.f32.mrb[2].mxu1 }
 0x305   :  { %v383_v6 = vadd.f32 %v382_v5, %v311_v4  ;;  %v489_v7 = vpop.f32.mrb[3].mxu1 }
 0x307   :  { %386 = vst [vmem:[%s742_s7] sm:$0xff] %v383_v6 }

</bundles_post_ra>
